<compile_context>
chip_gen: v6e
topology: v6e:2x2x1
jax: 0.10.0
libtpu: 0.0.40
codegen_flags: <defaults>
</compile_context>

<pallas_src>
import functools

import jax
import jax.numpy as jnp
from jax.experimental import pallas as pl
from jax.experimental.pallas import tpu as pltpu

INPUT_DIM = 6
HIDDEN_DIM = 64
OUTPUT_DIM = 4


def _round_up(n, m):
    return (n + m - 1) // m * m


def _cdiv(a, b):
    return -(-a // b)


def _suggest_pack():
    """pack=2 helps every generation; pack=4 additionally fills v6e/v7x MXUs."""
    try:
        kind = jax.devices()[0].device_kind.lower()
        if "v6" in kind or "v7" in kind:
            return 4
    except Exception:
        pass
    return 2


def _mlp_kernel(x_ref, w_in_ref, b_in_ref, w_hid_ref, b_hid_ref,
                w_out_ref, b_out_ref, o_ref, *, sub, n_sub):
    """Forward pass for one (tb2, pack*IN) batch tile, in sub-chunks of `sub` rows."""

    def mm(v, w):
        # MXU matmul: bf16 operands, f32 accumulation.
        return jnp.dot(v.astype(w.dtype), w, preferred_element_type=jnp.float32)

    @pl.loop(0, n_sub)
    def _(s):
        base = pl.multiple_of(s * sub, 8)
        x = x_ref[pl.ds(base, sub), :]                       # (sub, pack*6) f32

        # input layer + ReLU (bias/ReLU in f32 on the VPU)
        h = jax.nn.relu(mm(x, w_in_ref[...]) + b_in_ref[...])

        # 4 residual blocks, statically unrolled:
        #   h = relu(h + block_b(relu(block_a(h))))
        for blk in range(4):
            wa = w_hid_ref[2 * blk]                          # (pack*64, pack*64) bf16
            wb = w_hid_ref[2 * blk + 1]
            ba = b_hid_ref[2 * blk: 2 * blk + 1, :]          # (1, pack*64) f32
            bb = b_hid_ref[2 * blk + 1: 2 * blk + 2, :]
            ha = jax.nn.relu(mm(h, wa) + ba)
            hb = mm(ha, wb) + bb
            h = jax.nn.relu(h + hb)

        # output layer (no activation); every lane of the (sub, pack*4) store is real data
        o_ref[pl.ds(base, sub), :] = (
            mm(h, w_out_ref[...]) + b_out_ref[...]).astype(o_ref.dtype)


def pack_params(params, pack=2, weight_dtype=jnp.bfloat16):
    """Pack the 20-array (w, b alternating) list into 6 block-diagonal kernel inputs.

    Weights are [in, out] (transpose of PyTorch nn.Linear.weight).
    Lane chunk c of a packed row works on batch row r*pack + c, so every weight
    becomes diag(W,...,W) (`pack` copies) and every bias is tiled `pack` times.
    """
    ws = params[0::2]   # 10 weights
    bs = params[1::2]   # 10 biases, each (1, out)

    def blockdiag(w):
        fi, fo = w.shape
        out = jnp.zeros((pack * fi, pack * fo), jnp.float32)
        for c in range(pack):
            out = out.at[c * fi:(c + 1) * fi, c * fo:(c + 1) * fo].set(w)
        return out.astype(weight_dtype)

    def tile_b(b):
        return jnp.tile(b.astype(jnp.float32), (1, pack))

    w_in = blockdiag(ws[0])                                   # (pack*6,  pack*64)
    b_in = tile_b(bs[0])                                      # (1, pack*64)
    w_hid = jnp.stack([blockdiag(w) for w in ws[1:9]])        # (8, pack*64, pack*64)
    b_hid = jnp.concatenate([tile_b(b) for b in bs[1:9]], 0)  # (8, pack*64)
    w_out = blockdiag(ws[9])                                  # (pack*64, pack*4)
    b_out = tile_b(bs[9])                                     # (1, pack*4)
    return w_in, b_in, w_hid, b_hid, w_out, b_out


def mlp_pallas(x, packed, tile_rows=2048):
    """x: (B, INPUT_DIM) f32. packed: output of pack_params. Returns (B, OUTPUT_DIM)."""
    B = x.shape[0]
    w_in, b_in, w_hid, b_hid, w_out, b_out = packed
    pack = w_in.shape[0] // INPUT_DIM

    in_w = pack * INPUT_DIM      # packed input lane width
    out_w = pack * OUTPUT_DIM    # packed output lane width

    # --- tile sizing (packed rows) ---------------------------------------
    bpp_need = _cdiv(B, pack)
    # cap at half the batch so medium/large batches get >=2 grid steps (v7x 2 TCs)
    tb2 = max(8, min(_round_up(max(1, tile_rows // pack), 8),
                     _round_up(_cdiv(bpp_need, 2), 8)))
    # inner sub-chunk keeps f32 intermediates ~<=16 vregs each
    sub_target = max(8, 256 // pack)
    if tb2 > sub_target:
        tb2 = _round_up(tb2, sub_target)
        sub = sub_target
    else:
        sub = tb2
    n_sub = tb2 // sub

    bpp = _round_up(bpp_need, tb2)   # padded packed rows
    Bp = bpp * pack                  # padded batch rows

    # --- pack input (pure reshape when no padding is required) -----------
    if Bp == B:
        x_packed = x.reshape(bpp, in_w)
    else:
        x_pad = jnp.zeros((Bp, INPUT_DIM), x.dtype).at[:B].set(x)
        x_packed = x_pad.reshape(bpp, in_w)

    grid = (bpp // tb2,)
    kernel = functools.partial(_mlp_kernel, sub=sub, n_sub=n_sub)

    # Parameters: full blocks with constant index_map -> resident across grid.
    out_packed = pl.pallas_call(
        kernel,
        out_shape=jax.ShapeDtypeStruct((bpp, out_w), jnp.float32),
        grid_spec=pl.GridSpec(
            grid=grid,
            in_specs=[
                pl.BlockSpec((tb2, in_w), lambda i: (i, 0)),
                pl.BlockSpec(w_in.shape, lambda i: (0, 0)),
                pl.BlockSpec(b_in.shape, lambda i: (0, 0)),
                pl.BlockSpec(w_hid.shape, lambda i: (0, 0, 0)),
                pl.BlockSpec(b_hid.shape, lambda i: (0, 0)),
                pl.BlockSpec(w_out.shape, lambda i: (0, 0)),
                pl.BlockSpec(b_out.shape, lambda i: (0, 0)),
            ],
            out_specs=pl.BlockSpec((tb2, out_w), lambda i: (i, 0)),
        ),
        compiler_params=pltpu.CompilerParams(
            dimension_semantics=("parallel",),
        ),
    )(x_packed, w_in, b_in, w_hid, b_hid, w_out, b_out)

    # unpack: packed row r, lane chunk c -> batch row r*pack + c (free reshape)
    return out_packed.reshape(Bp, OUTPUT_DIM)[:B]


def init_params(key):
    """nn.Linear-style init: uniform(-1/sqrt(fan_in), 1/sqrt(fan_in))."""
    dims = [(INPUT_DIM, HIDDEN_DIM)] + [(HIDDEN_DIM, HIDDEN_DIM)] * 8 + [
        (HIDDEN_DIM, OUTPUT_DIM)
    ]
    params = []
    for (fan_in, fan_out) in dims:
        key, kw, kb = jax.random.split(key, 3)
        bound = 1.0 / (fan_in ** 0.5)
        w = jax.random.uniform(
            kw, (fan_in, fan_out), jnp.float32, minval=-bound, maxval=bound)
        b = jax.random.uniform(
            kb, (1, fan_out), jnp.float32, minval=-bound, maxval=bound)
        params += [w, b]
    return params


def mlp_reference(x, params, matmul_dtype=jnp.float32):
    """Plain-JAX reference of the PyTorch forward.

    matmul_dtype lets the reference use the same bf16-operand / f32-accumulate
    matmuls as the kernel for a tight comparison.
    """
    def lin(v, w, b):
        return jnp.dot(v.astype(matmul_dtype), w.astype(matmul_dtype),
                       preferred_element_type=jnp.float32) + b

    h = jax.nn.relu(lin(x, params[0], params[1]))
    for blk in range(4):
        base = 2 + blk * 4
        wa, ba, wb, bb = params[base: base + 4]
        ha = jax.nn.relu(lin(h, wa, ba))
        hb = lin(ha, wb, bb)
        h = jax.nn.relu(h + hb)
    return lin(h, params[-2], params[-1])


if __name__ == "__main__":
    key = jax.random.PRNGKey(0)
    kx, kx2, kp = jax.random.split(key, 3)

    params = init_params(kp)
    pack = _suggest_pack()                 # 2 everywhere, 4 on v6e/v7x
    packed = pack_params(params, pack=pack, weight_dtype=jnp.bfloat16)

    def check(x):
        out = jax.block_until_ready(mlp_pallas(x, packed, tile_rows=2048))
        assert out.shape == (x.shape[0], OUTPUT_DIM)
        # tight check vs a reference using the same bf16-operand matmuls
        ref_bf16 = mlp_reference(x, params, matmul_dtype=jnp.bfloat16)
        assert jnp.allclose(out, ref_bf16, atol=2e-3, rtol=2e-3), "mismatch vs bf16 ref"
        # loose sanity check vs pure-f32 reference (bf16 matmul rounding only)
        ref_f32 = mlp_reference(x, params, matmul_dtype=jnp.float32)
        assert jnp.allclose(out, ref_f32, atol=5e-2, rtol=5e-2), "mismatch vs f32 ref"
        return out

    # small batch (single grid step, zero-copy reshape path)
    x = jax.random.normal(kx, (16, INPUT_DIM), dtype=jnp.float32)
    check(x)

    # non-divisible batch (padding path, multi-step grid)
    x2 = jax.random.normal(kx2, (300, INPUT_DIM), dtype=jnp.float32)
    check(x2)

    print("KERNEL_OK")
</pallas_src>

<mosaic_0001>
module attributes {stable_mosaic.version = 11 : i64} {
  func.func @_mlp_kernel(%arg0: i32, %arg1: memref<8x12xf32, #tpu.memory_space<vmem>>, %arg2: memref<12x128xbf16, #tpu.memory_space<vmem>>, %arg3: memref<1x128xf32, #tpu.memory_space<vmem>>, %arg4: memref<8x128x128xbf16, #tpu.memory_space<vmem>>, %arg5: memref<8x128xf32, #tpu.memory_space<vmem>>, %arg6: memref<128x8xbf16, #tpu.memory_space<vmem>>, %arg7: memref<1x8xf32, #tpu.memory_space<vmem>>, %arg8: memref<8x8xf32, #tpu.memory_space<vmem>>) attributes {dimension_semantics = [#tpu.dimension_semantics<parallel>], iteration_bounds = array<i64: 1>, scalar_prefetch = 0 : i64, scratch_operands = 0 : i64, tpu.core_type = #tpu.core_type<tc>, window_params = [{transform_indices = @transform_0, window_bounds = array<i64: 8, 12>}, {pipeline_mode = #tpu.pipeline_mode<synchronous>, transform_indices = @transform_1, window_bounds = array<i64: 12, 128>}, {pipeline_mode = #tpu.pipeline_mode<synchronous>, transform_indices = @transform_2, window_bounds = array<i64: 1, 128>}, {pipeline_mode = #tpu.pipeline_mode<synchronous>, transform_indices = @transform_3, window_bounds = array<i64: 8, 128, 128>}, {pipeline_mode = #tpu.pipeline_mode<synchronous>, transform_indices = @transform_4, window_bounds = array<i64: 8, 128>}, {pipeline_mode = #tpu.pipeline_mode<synchronous>, transform_indices = @transform_5, window_bounds = array<i64: 128, 8>}, {pipeline_mode = #tpu.pipeline_mode<synchronous>, transform_indices = @transform_6, window_bounds = array<i64: 1, 8>}, {transform_indices = @transform_7, window_bounds = array<i64: 8, 8>}]} {
    %c0_i32 = arith.constant 0 : i32
    %c1_i32 = arith.constant 1 : i32
    %0 = arith.muli %c0_i32, %c1_i32 : i32
    %c0_i32_0 = arith.constant 0 : i32
    %1 = arith.addi %c0_i32_0, %0 : i32
    %c8_i32 = arith.constant 8 : i32
    %2 = arith.muli %1, %c8_i32 : i32
    %3 = tpu.assume_multiple %2, 8 : i32
    %4 = arith.index_cast %3 : i32 to index
    %c0 = arith.constant 0 : index
    %5 = vector.load %arg1[%4, %c0] : memref<8x12xf32, #tpu.memory_space<vmem>>, vector<8x12xf32>
    %c0_1 = arith.constant 0 : index
    %c0_2 = arith.constant 0 : index
    %6 = vector.load %arg2[%c0_1, %c0_2] : memref<12x128xbf16, #tpu.memory_space<vmem>>, vector<12x128xbf16>
    %7 = arith.truncf %5 : vector<8x12xf32> to vector<8x12xbf16>
    %cst = arith.constant dense<0.000000e+00> : vector<8x128xf32>
    %8 = tpu.matmul %7, %6, %cst {dimension_numbers = #tpu.dot_dimension_numbers<[1], [0], [0], [1], [0, 0, 1, 1], [], []>} : vector<8x12xbf16>, vector<12x128xbf16>, vector<8x128xf32> -> vector<8x128xf32>
    %c0_3 = arith.constant 0 : index
    %c0_4 = arith.constant 0 : index
    %9 = vector.load %arg3[%c0_3, %c0_4] : memref<1x128xf32, #tpu.memory_space<vmem>>, vector<1x128xf32>
    %10 = vector.broadcast %9 : vector<1x128xf32> to vector<8x128xf32>
    %11 = arith.addf %8, %10 : vector<8x128xf32>
    %cst_5 = arith.constant 0.000000e+00 : f32
    %12 = vector.broadcast %cst_5 : f32 to vector<8x128xf32>
    %13 = arith.maximumf %11, %12 : vector<8x128xf32>
    %c0_6 = arith.constant 0 : index
    %c0_7 = arith.constant 0 : index
    %c0_8 = arith.constant 0 : index
    %14 = vector.load %arg4[%c0_6, %c0_7, %c0_8] : memref<8x128x128xbf16, #tpu.memory_space<vmem>>, vector<1x128x128xbf16>
    %15 = vector.shape_cast %14 : vector<1x128x128xbf16> to vector<128x128xbf16>
    %c1 = arith.constant 1 : index
    %c0_9 = arith.constant 0 : index
    %c0_10 = arith.constant 0 : index
    %16 = vector.load %arg4[%c1, %c0_9, %c0_10] : memref<8x128x128xbf16, #tpu.memory_space<vmem>>, vector<1x128x128xbf16>
    %17 = vector.shape_cast %16 : vector<1x128x128xbf16> to vector<128x128xbf16>
    %c0_11 = arith.constant 0 : index
    %c0_12 = arith.constant 0 : index
    %18 = vector.load %arg5[%c0_11, %c0_12] : memref<8x128xf32, #tpu.memory_space<vmem>>, vector<1x128xf32>
    %c1_13 = arith.constant 1 : index
    %c0_14 = arith.constant 0 : index
    %19 = vector.load %arg5[%c1_13, %c0_14] : memref<8x128xf32, #tpu.memory_space<vmem>>, vector<1x128xf32>
    %20 = arith.truncf %13 : vector<8x128xf32> to vector<8x128xbf16>
    %cst_15 = arith.constant dense<0.000000e+00> : vector<8x128xf32>
    %21 = tpu.matmul %20, %15, %cst_15 {dimension_numbers = #tpu.dot_dimension_numbers<[1], [0], [0], [1], [0, 0, 1, 1], [], []>} : vector<8x128xbf16>, vector<128x128xbf16>, vector<8x128xf32> -> vector<8x128xf32>
    %22 = vector.broadcast %18 : vector<1x128xf32> to vector<8x128xf32>
    %23 = arith.addf %21, %22 : vector<8x128xf32>
    %cst_16 = arith.constant 0.000000e+00 : f32
    %24 = vector.broadcast %cst_16 : f32 to vector<8x128xf32>
    %25 = arith.maximumf %23, %24 : vector<8x128xf32>
    %26 = arith.truncf %25 : vector<8x128xf32> to vector<8x128xbf16>
    %cst_17 = arith.constant dense<0.000000e+00> : vector<8x128xf32>
    %27 = tpu.matmul %26, %17, %cst_17 {dimension_numbers = #tpu.dot_dimension_numbers<[1], [0], [0], [1], [0, 0, 1, 1], [], []>} : vector<8x128xbf16>, vector<128x128xbf16>, vector<8x128xf32> -> vector<8x128xf32>
    %28 = vector.broadcast %19 : vector<1x128xf32> to vector<8x128xf32>
    %29 = arith.addf %27, %28 : vector<8x128xf32>
    %30 = arith.addf %13, %29 : vector<8x128xf32>
    %cst_18 = arith.constant 0.000000e+00 : f32
    %31 = vector.broadcast %cst_18 : f32 to vector<8x128xf32>
    %32 = arith.maximumf %30, %31 : vector<8x128xf32>
    %c2 = arith.constant 2 : index
    %c0_19 = arith.constant 0 : index
    %c0_20 = arith.constant 0 : index
    %33 = vector.load %arg4[%c2, %c0_19, %c0_20] : memref<8x128x128xbf16, #tpu.memory_space<vmem>>, vector<1x128x128xbf16>
    %34 = vector.shape_cast %33 : vector<1x128x128xbf16> to vector<128x128xbf16>
    %c3 = arith.constant 3 : index
    %c0_21 = arith.constant 0 : index
    %c0_22 = arith.constant 0 : index
    %35 = vector.load %arg4[%c3, %c0_21, %c0_22] : memref<8x128x128xbf16, #tpu.memory_space<vmem>>, vector<1x128x128xbf16>
    %36 = vector.shape_cast %35 : vector<1x128x128xbf16> to vector<128x128xbf16>
    %c2_23 = arith.constant 2 : index
    %c0_24 = arith.constant 0 : index
    %37 = vector.load %arg5[%c2_23, %c0_24] : memref<8x128xf32, #tpu.memory_space<vmem>>, vector<1x128xf32>
    %c3_25 = arith.constant 3 : index
    %c0_26 = arith.constant 0 : index
    %38 = vector.load %arg5[%c3_25, %c0_26] : memref<8x128xf32, #tpu.memory_space<vmem>>, vector<1x128xf32>
    %39 = arith.truncf %32 : vector<8x128xf32> to vector<8x128xbf16>
    %cst_27 = arith.constant dense<0.000000e+00> : vector<8x128xf32>
    %40 = tpu.matmul %39, %34, %cst_27 {dimension_numbers = #tpu.dot_dimension_numbers<[1], [0], [0], [1], [0, 0, 1, 1], [], []>} : vector<8x128xbf16>, vector<128x128xbf16>, vector<8x128xf32> -> vector<8x128xf32>
    %41 = vector.broadcast %37 : vector<1x128xf32> to vector<8x128xf32>
    %42 = arith.addf %40, %41 : vector<8x128xf32>
    %cst_28 = arith.constant 0.000000e+00 : f32
    %43 = vector.broadcast %cst_28 : f32 to vector<8x128xf32>
    %44 = arith.maximumf %42, %43 : vector<8x128xf32>
    %45 = arith.truncf %44 : vector<8x128xf32> to vector<8x128xbf16>
    %cst_29 = arith.constant dense<0.000000e+00> : vector<8x128xf32>
    %46 = tpu.matmul %45, %36, %cst_29 {dimension_numbers = #tpu.dot_dimension_numbers<[1], [0], [0], [1], [0, 0, 1, 1], [], []>} : vector<8x128xbf16>, vector<128x128xbf16>, vector<8x128xf32> -> vector<8x128xf32>
    %47 = vector.broadcast %38 : vector<1x128xf32> to vector<8x128xf32>
    %48 = arith.addf %46, %47 : vector<8x128xf32>
    %49 = arith.addf %32, %48 : vector<8x128xf32>
    %cst_30 = arith.constant 0.000000e+00 : f32
    %50 = vector.broadcast %cst_30 : f32 to vector<8x128xf32>
    %51 = arith.maximumf %49, %50 : vector<8x128xf32>
    %c4 = arith.constant 4 : index
    %c0_31 = arith.constant 0 : index
    %c0_32 = arith.constant 0 : index
    %52 = vector.load %arg4[%c4, %c0_31, %c0_32] : memref<8x128x128xbf16, #tpu.memory_space<vmem>>, vector<1x128x128xbf16>
    %53 = vector.shape_cast %52 : vector<1x128x128xbf16> to vector<128x128xbf16>
    %c5 = arith.constant 5 : index
    %c0_33 = arith.constant 0 : index
    %c0_34 = arith.constant 0 : index
    %54 = vector.load %arg4[%c5, %c0_33, %c0_34] : memref<8x128x128xbf16, #tpu.memory_space<vmem>>, vector<1x128x128xbf16>
    %55 = vector.shape_cast %54 : vector<1x128x128xbf16> to vector<128x128xbf16>
    %c4_35 = arith.constant 4 : index
    %c0_36 = arith.constant 0 : index
    %56 = vector.load %arg5[%c4_35, %c0_36] : memref<8x128xf32, #tpu.memory_space<vmem>>, vector<1x128xf32>
    %c5_37 = arith.constant 5 : index
    %c0_38 = arith.constant 0 : index
    %57 = vector.load %arg5[%c5_37, %c0_38] : memref<8x128xf32, #tpu.memory_space<vmem>>, vector<1x128xf32>
    %58 = arith.truncf %51 : vector<8x128xf32> to vector<8x128xbf16>
    %cst_39 = arith.constant dense<0.000000e+00> : vector<8x128xf32>
    %59 = tpu.matmul %58, %53, %cst_39 {dimension_numbers = #tpu.dot_dimension_numbers<[1], [0], [0], [1], [0, 0, 1, 1], [], []>} : vector<8x128xbf16>, vector<128x128xbf16>, vector<8x128xf32> -> vector<8x128xf32>
    %60 = vector.broadcast %56 : vector<1x128xf32> to vector<8x128xf32>
    %61 = arith.addf %59, %60 : vector<8x128xf32>
    %cst_40 = arith.constant 0.000000e+00 : f32
    %62 = vector.broadcast %cst_40 : f32 to vector<8x128xf32>
    %63 = arith.maximumf %61, %62 : vector<8x128xf32>
    %64 = arith.truncf %63 : vector<8x128xf32> to vector<8x128xbf16>
    %cst_41 = arith.constant dense<0.000000e+00> : vector<8x128xf32>
    %65 = tpu.matmul %64, %55, %cst_41 {dimension_numbers = #tpu.dot_dimension_numbers<[1], [0], [0], [1], [0, 0, 1, 1], [], []>} : vector<8x128xbf16>, vector<128x128xbf16>, vector<8x128xf32> -> vector<8x128xf32>
    %66 = vector.broadcast %57 : vector<1x128xf32> to vector<8x128xf32>
    %67 = arith.addf %65, %66 : vector<8x128xf32>
    %68 = arith.addf %51, %67 : vector<8x128xf32>
    %cst_42 = arith.constant 0.000000e+00 : f32
    %69 = vector.broadcast %cst_42 : f32 to vector<8x128xf32>
    %70 = arith.maximumf %68, %69 : vector<8x128xf32>
    %c6 = arith.constant 6 : index
    %c0_43 = arith.constant 0 : index
    %c0_44 = arith.constant 0 : index
    %71 = vector.load %arg4[%c6, %c0_43, %c0_44] : memref<8x128x128xbf16, #tpu.memory_space<vmem>>, vector<1x128x128xbf16>
    %72 = vector.shape_cast %71 : vector<1x128x128xbf16> to vector<128x128xbf16>
    %c7 = arith.constant 7 : index
    %c0_45 = arith.constant 0 : index
    %c0_46 = arith.constant 0 : index
    %73 = vector.load %arg4[%c7, %c0_45, %c0_46] : memref<8x128x128xbf16, #tpu.memory_space<vmem>>, vector<1x128x128xbf16>
    %74 = vector.shape_cast %73 : vector<1x128x128xbf16> to vector<128x128xbf16>
    %c6_47 = arith.constant 6 : index
    %c0_48 = arith.constant 0 : index
    %75 = vector.load %arg5[%c6_47, %c0_48] : memref<8x128xf32, #tpu.memory_space<vmem>>, vector<1x128xf32>
    %c7_49 = arith.constant 7 : index
    %c0_50 = arith.constant 0 : index
    %76 = vector.load %arg5[%c7_49, %c0_50] : memref<8x128xf32, #tpu.memory_space<vmem>>, vector<1x128xf32>
    %77 = arith.truncf %70 : vector<8x128xf32> to vector<8x128xbf16>
    %cst_51 = arith.constant dense<0.000000e+00> : vector<8x128xf32>
    %78 = tpu.matmul %77, %72, %cst_51 {dimension_numbers = #tpu.dot_dimension_numbers<[1], [0], [0], [1], [0, 0, 1, 1], [], []>} : vector<8x128xbf16>, vector<128x128xbf16>, vector<8x128xf32> -> vector<8x128xf32>
    %79 = vector.broadcast %75 : vector<1x128xf32> to vector<8x128xf32>
    %80 = arith.addf %78, %79 : vector<8x128xf32>
    %cst_52 = arith.constant 0.000000e+00 : f32
    %81 = vector.broadcast %cst_52 : f32 to vector<8x128xf32>
    %82 = arith.maximumf %80, %81 : vector<8x128xf32>
    %83 = arith.truncf %82 : vector<8x128xf32> to vector<8x128xbf16>
    %cst_53 = arith.constant dense<0.000000e+00> : vector<8x128xf32>
    %84 = tpu.matmul %83, %74, %cst_53 {dimension_numbers = #tpu.dot_dimension_numbers<[1], [0], [0], [1], [0, 0, 1, 1], [], []>} : vector<8x128xbf16>, vector<128x128xbf16>, vector<8x128xf32> -> vector<8x128xf32>
    %85 = vector.broadcast %76 : vector<1x128xf32> to vector<8x128xf32>
    %86 = arith.addf %84, %85 : vector<8x128xf32>
    %87 = arith.addf %70, %86 : vector<8x128xf32>
    %cst_54 = arith.constant 0.000000e+00 : f32
    %88 = vector.broadcast %cst_54 : f32 to vector<8x128xf32>
    %89 = arith.maximumf %87, %88 : vector<8x128xf32>
    %c0_55 = arith.constant 0 : index
    %c0_56 = arith.constant 0 : index
    %90 = vector.load %arg6[%c0_55, %c0_56] : memref<128x8xbf16, #tpu.memory_space<vmem>>, vector<128x8xbf16>
    %91 = arith.truncf %89 : vector<8x128xf32> to vector<8x128xbf16>
    %cst_57 = arith.constant dense<0.000000e+00> : vector<8x8xf32>
    %92 = tpu.matmul %91, %90, %cst_57 {dimension_numbers = #tpu.dot_dimension_numbers<[1], [0], [0], [1], [0, 0, 1, 1], [], []>} : vector<8x128xbf16>, vector<128x8xbf16>, vector<8x8xf32> -> vector<8x8xf32>
    %c0_58 = arith.constant 0 : index
    %c0_59 = arith.constant 0 : index
    %93 = vector.load %arg7[%c0_58, %c0_59] : memref<1x8xf32, #tpu.memory_space<vmem>>, vector<1x8xf32>
    %94 = vector.broadcast %93 : vector<1x8xf32> to vector<8x8xf32>
    %95 = arith.addf %92, %94 : vector<8x8xf32>
    %96 = arith.index_cast %3 : i32 to index
    %c0_60 = arith.constant 0 : index
    %97 = vector.load %arg8[%96, %c0_60] : memref<8x8xf32, #tpu.memory_space<vmem>>, vector<8x8xf32>
    tpu.vector_store %arg8[%96, %c0_60], %95 {strides = array<i32>} : memref<8x8xf32, #tpu.memory_space<vmem>>, vector<8x8xf32>,
    %c1_i32_61 = arith.constant 1 : i32
    return
  }
  func.func @transform_0(%arg0: i32) -> (i32, i32) {
    %c0_i32 = arith.constant 0 : i32
    %c0_i32_0 = arith.constant 0 : i32
    return %arg0, %c0_i32 : i32, i32
  }
  func.func @transform_1(%arg0: i32) -> (i32, i32) {
    %c0_i32 = arith.constant 0 : i32
    %c0_i32_0 = arith.constant 0 : i32
    %c0_i32_1 = arith.constant 0 : i32
    return %c0_i32, %c0_i32_0 : i32, i32
  }
  func.func @transform_2(%arg0: i32) -> (i32, i32) {
    %c0_i32 = arith.constant 0 : i32
    %c0_i32_0 = arith.constant 0 : i32
    %c0_i32_1 = arith.constant 0 : i32
    return %c0_i32, %c0_i32_0 : i32, i32
  }
  func.func @transform_3(%arg0: i32) -> (i32, i32, i32) {
    %c0_i32 = arith.constant 0 : i32
    %c0_i32_0 = arith.constant 0 : i32
    %c0_i32_1 = arith.constant 0 : i32
    %c0_i32_2 = arith.constant 0 : i32
    return %c0_i32, %c0_i32_0, %c0_i32_1 : i32, i32, i32
  }
  func.func @transform_4(%arg0: i32) -> (i32, i32) {
    %c0_i32 = arith.constant 0 : i32
    %c0_i32_0 = arith.constant 0 : i32
    %c0_i32_1 = arith.constant 0 : i32
    return %c0_i32, %c0_i32_0 : i32, i32
  }
  func.func @transform_5(%arg0: i32) -> (i32, i32) {
    %c0_i32 = arith.constant 0 : i32
    %c0_i32_0 = arith.constant 0 : i32
    %c0_i32_1 = arith.constant 0 : i32
    return %c0_i32, %c0_i32_0 : i32, i32
  }
  func.func @transform_6(%arg0: i32) -> (i32, i32) {
    %c0_i32 = arith.constant 0 : i32
    %c0_i32_0 = arith.constant 0 : i32
    %c0_i32_1 = arith.constant 0 : i32
    return %c0_i32, %c0_i32_0 : i32, i32
  }
  func.func @transform_7(%arg0: i32) -> (i32, i32) {
    %c0_i32 = arith.constant 0 : i32
    %c0_i32_0 = arith.constant 0 : i32
    return %arg0, %c0_i32 : i32, i32
  }
}

</mosaic_0001>

<bundles_post_ra>
// kernel: tpu_custom_call.1
= control target key start
LH: loop header
LB: loop body
LE: loop exit
PB: predicated region body
PF: predicated region fallthrough
CT: control target
= control target key end

     0   :  { %12 = vsyncpa [#allocation3], 0  ;;  %s1831_s0 = inlined_call_operand.vmem [shape: f32[8,12], index: 0, kind: input, shape index: {}]   ;;  %s1832_s1 = inlined_call_operand.vmem [shape: bf16[12,128], index: 1, kind: input, shape index: {}]   ;;  %s1833_s2 = inlined_call_operand.vmem [shape: f32[1,128], index: 2, kind: input, shape index: {}]   ;;  %s1834_s3 = inlined_call_operand.hbm [shape: bf16[8,128,128], index: 3, kind: input, shape index: {}]   ;;  %s1835_s4 = inlined_call_operand.vmem [shape: f32[8,128], index: 4, kind: input, shape index: {}]   ;;  %s1836_s5 = inlined_call_operand.vmem [shape: bf16[128,8], index: 5, kind: input, shape index: {}]   ;;  %s1837_s6 = inlined_call_operand.vmem [shape: f32[1,8], index: 6, kind: input, shape index: {}]   ;;  %s1838_s7 = inlined_call_operand.hbm [shape: f32[8,8], index: 7, kind: output, shape index: {}]  }
   0x1   :  { %13 = vsyncpa [#allocation4], 0  ;;  %s1611_s24 = smov [#allocation2]  }
   0x2   :  { %s25_s25 = sshll.u32 %s1611_s24, 4  ;;  %s26_s25 = int_to_ptr.vmem [resolvable:$true] %s25_s25 }
   0x3   :  { %s1575_s26 = scalar_lea.vmem %s26_s25, 8192  ;;  %p1580_p1 = scmp.lt.s32.totalorder %s26_s25, %s26_s25 }
   0x4   :  { %p1576_p0 = scmp.ne.s32.totalorder %s26_s25, %s1575_s26  ;;  %p1581_p2 = scmp.lt.s32.totalorder %s1575_s26, %s1575_s26 }
   0x6   :  { %p1582_p3 = por %p1581_p2, %p1580_p1 }
   0x8   :  { %p1583_p4 = pnand %p1582_p3, %p1576_p0 }
   0xa   :  { %1586 = shalt.err (!%p1583_p4)
}
   0xb   :  { %s1612_s27 = smov 64   ;;  %s1613_s28 = smov 4  }
   0xc   :  { %31 = dma.hbm_to_vmem [thread:$0]  %s1834_s3, 8192, %s26_s25, [#allocation3], %s1612_s27, %s1612_s27, %s1613_s28  }
   0xd   :  { %1607 = dma.done.wait [#allocation3], 8192  }
   0xe   :  { %1608 = vsyncadd [#allocation3], 4294959104  ;;  %v1614_v0 = vmov 0.0   ;;  %vm1615_vm0 = vmmov 0   ;;  %vm62_vm1 = vcmask 1045504   ;;  %v42_v2 = vld [vmem:[%s1831_s0] sm:$0xff] }
   0xf   :  { %1302 = vmatprep.subr.bf16.mxu0 %v1614_v0  ;;  %1304 = vmatprep.mubr.msk.bf16.mxu0 %vm1615_vm0, %v1614_v0  ;;  %v1494_v1 = vld [vmem:[%s1832_s1] sm:$0x3f]   ;;  %v45_v4 = vpack.c.bf16 %v42_v2, %v42_v2  ;;  %v1495_v5 = vld [vmem:[#allocation2 + $0x38] sm:$0xff]   ;;  %vm58_vm2 = vcmask 97280   ;;  %v1496_v6 = vld [vmem:[#allocation2 + $0x30] sm:$0xff]   ;;  %s1616_s17 = smov [#allocation5]  }
  0x10   :  { %1308 = vmatprep.subr.bf16.mxu1 %v1614_v0  ;;  %1324 = vmatprep.mubr.msk.bf16.mxu1 %vm1615_vm0, %v1614_v0  ;;  %v64_v3 = vsel %vm62_vm1, %v1494_v1, 0  ;;  %v1497_v7 = vld [vmem:[#allocation2 + $0x28] sm:$0xff]   ;;  %v1498_v8 = vld [vmem:[#allocation2 + $0x20] sm:$0xff]   ;;  %v1499_v9 = vld [vmem:[#allocation2 + $0x18] sm:$0xff]   ;;  %vm1118_vm3 = vcmask 64512  }
  0x11   :  { %1303 = vmatpush3.bf16.msra.mxu0 %v64_v3  ;;  %1309 = vmatpush3.bf16.msra.mxu1 %v1495_v5  ;;  %v1500_v10 = vld [vmem:[#allocation2 + $0x10] sm:$0xff]   ;;  %v1501_v11 = vld [vmem:[#allocation2 + $0x8] sm:$0xff]   ;;  %v1502_v12 = vld [vmem:[#allocation2] sm:$0xff]  }
  0x12   :  { %1328 = vmatprep.subr.bf16.mxu0 %v1614_v0  ;;  %1310 = vmatprep.subr.bf16.mxu1 %v1614_v0  ;;  %v1503_v13 = vld [vmem:[#allocation2 + $0x78] sm:$0xff]   ;;  %v1504_v14 = vld [vmem:[#allocation2 + $0x70] sm:$0xff]   ;;  %v1505_v15 = vld [vmem:[#allocation2 + $0x68] sm:$0xff]  }
  0x13   :  { %v1506_v16 = vld [vmem:[#allocation2 + $0x60] sm:$0xff]   ;;  %v1507_v17 = vld [vmem:[#allocation2 + $0x58] sm:$0xff]   ;;  %v1508_v18 = vld [vmem:[#allocation2 + $0x50] sm:$0xff]  }
  0x14   :  { %1305 = vmatmul.mubr.msk.bf16.vlgmr.msra.gmra.mxu0 %vm58_vm2, %v45_v4  ;;  %v1135_v19 = vld [vmem:[%s1833_s2] ss:$0 sm:$0xff]  ;;  %v1509_v27 = vld [vmem:[#allocation2 + $0x48] sm:$0xff]   ;;  %v1511_v29 = vld [vmem:[#allocation2 + $0xb8] sm:$0xff]  }
  0x15   :  { %1344 = vmatprep.mubr.msk.bf16.mxu0 %vm1615_vm0, %v1614_v0  ;;  %1311 = vmatpush3.bf16.msra.mxu1 %v1496_v6  ;;  %v1510_v28 = vld [vmem:[#allocation2 + $0x40] sm:$0xff]   ;;  %v1512_v30 = vld [vmem:[#allocation2 + $0xb0] sm:$0xff]   ;;  %v1513_v31 = vld [vmem:[#allocation2 + $0xa8] sm:$0xff]  }
  0x16   :  { %1312 = vmatprep.subr.bf16.mxu1 %v1614_v0  ;;  %1329 = vmatpush3.bf16.msra.mxu0 %v1503_v13  ;;  %v1514_v32 = vld [vmem:[#allocation2 + $0xa0] sm:$0xff]   ;;  %v1515_v33 = vld [vmem:[#allocation2 + $0x98] sm:$0xff]   ;;  %v1516_v34 = vld [vmem:[#allocation2 + $0x90] sm:$0xff]  }
  0x17   :  { %1330 = vmatprep.subr.bf16.mxu0 %v1614_v0  ;;  %v1138_v35 = vld [vmem:[%s1835_s4] ss:$0 sm:$0xff]  ;;  %v1517_v43 = vld [vmem:[#allocation2 + $0x88] sm:$0xff]   ;;  %v1519_v45 = vld [vmem:[#allocation2 + $0xf8] sm:$0xff]  }
  0x18   :  { %v1518_v44 = vld [vmem:[#allocation2 + $0x80] sm:$0xff]   ;;  %v1520_v46 = vld [vmem:[#allocation2 + $0xf0] sm:$0xff]   ;;  %v1521_v47 = vld [vmem:[#allocation2 + $0xe8] sm:$0xff]  }
  0x19   :  { %1313 = vmatpush3.bf16.msra.mxu1 %v1497_v7  ;;  %v1522_v48 = vld [vmem:[#allocation2 + $0xe0] sm:$0xff]   ;;  %v1523_v49 = vld [vmem:[#allocation2 + $0xd8] sm:$0xff]   ;;  %v1524_v50 = vld [vmem:[#allocation2 + $0xd0] sm:$0xff]  }
  0x1a   :  { %1314 = vmatprep.subr.bf16.mxu1 %v1614_v0  ;;  %1331 = vmatpush3.bf16.msra.mxu0 %v1504_v14  ;;  %v1147_v51 = vld [vmem:[%s1835_s4 + $0x1] ss:$0 sm:$0xff]  ;;  %v1525_v60 = vld [vmem:[#allocation2 + $0xc8] sm:$0xff]   ;;  %v1527_v62 = vld [vmem:[#allocation2 + $0x138] sm:$0xff]  }
  0x1b   :  { %1332 = vmatprep.subr.bf16.mxu0 %v1614_v0  ;;  %v1526_v61 = vld [vmem:[#allocation2 + $0xc0] sm:$0xff]   ;;  %v1528_v63 = vld [vmem:[#allocation2 + $0x130] sm:$0xff]   ;;  %v1529_v1 = vld [vmem:[#allocation2 + $0x128] sm:$0xff]  }
  0x1c   :  { %v1530_v2 = vld [vmem:[#allocation2 + $0x120] sm:$0xff]   ;;  %v1531_v3 = vld [vmem:[#allocation2 + $0x118] sm:$0xff]   ;;  %v1532_v4 = vld [vmem:[#allocation2 + $0x110] sm:$0xff]  }
  0x1d   :  { %1315 = vmatpush3.bf16.msra.mxu1 %v1498_v8  ;;  %v1156_v5 = vld [vmem:[%s1835_s4 + $0x2] ss:$0 sm:$0xff]  ;;  %v1533_v13 = vld [vmem:[#allocation2 + $0x108] sm:$0xff]  }
  0x1e   :  { %1316 = vmatprep.subr.bf16.mxu1 %v1614_v0  ;;  %1333 = vmatpush3.bf16.msra.mxu0 %v1505_v15  ;;  %v1534_v14 = vld [vmem:[#allocation2 + $0x100] sm:$0xff]   ;;  %v1535_v15 = vld [vmem:[#allocation2 + $0x178] sm:$0xff]  }
  0x1f   :  { %1334 = vmatprep.subr.bf16.mxu0 %v1614_v0 }
  0x21   :  { %1317 = vmatpush3.bf16.msra.mxu1 %v1499_v9 }
  0x22   :  { %1318 = vmatprep.subr.bf16.mxu1 %v1614_v0  ;;  %1335 = vmatpush3.bf16.msra.mxu0 %v1506_v16  ;;  %v1536_v16 = vld [vmem:[#allocation2 + $0x170] sm:$0xff]  }
  0x23   :  { %1336 = vmatprep.subr.bf16.mxu0 %v1614_v0 }
  0x25   :  { %1319 = vmatpush3.bf16.msra.mxu1 %v1500_v10 }
  0x26   :  { %1320 = vmatprep.subr.bf16.mxu1 %v1614_v0  ;;  %1337 = vmatpush3.bf16.msra.mxu0 %v1507_v17  ;;  %v1537_v17 = vld [vmem:[#allocation2 + $0x168] sm:$0xff]  }
  0x27   :  { %1338 = vmatprep.subr.bf16.mxu0 %v1614_v0 }
  0x29   :  { %1321 = vmatpush3.bf16.msra.mxu1 %v1501_v11 }
  0x2a   :  { %1322 = vmatprep.subr.bf16.mxu1 %v1614_v0  ;;  %1339 = vmatpush3.bf16.msra.mxu0 %v1508_v18  ;;  %v1538_v18 = vld [vmem:[#allocation2 + $0x160] sm:$0xff]  }
  0x2b   :  { %1340 = vmatprep.subr.bf16.mxu0 %v1614_v0 }
  0x2d   :  { %1323 = vmatpush3.bf16.msra.mxu1 %v1502_v12 }
  0x2e   :  { %1348 = vmatprep.subr.bf16.mxu1 %v1614_v0  ;;  %1341 = vmatpush3.bf16.msra.mxu0 %v1509_v27 }
  0x2f   :  { %1342 = vmatprep.subr.bf16.mxu0 %v1614_v0 }
  0x32   :  { %1343 = vmatpush3.bf16.msra.mxu0 %v1510_v28 }
  0x33   :  { %1368 = vmatprep.subr.bf16.mxu0 %v1614_v0 }
  0xd4   :  { %v100_v20 = vpop.f32.mrf.mxu0 }
  0xd5   :  { %v101_v21 = vadd.f32 %v1135_v19, %v100_v20  ;;  %v1539_v19 = vld [vmem:[#allocation2 + $0x158] sm:$0xff]   ;;  %v1540_v20 = vld [vmem:[#allocation2 + $0x150] sm:$0xff]  }
  0xd6   :  { %v1306_v22 = vpop.f32.mrf.mxu0 }
  0xd7   :  { %v1692_v23 = vmax.f32 %v101_v21, 0.0  ;;  %v1165_v21 = vld [vmem:[%s1835_s4 + $0x3] ss:$0 sm:$0xff] }
  0xd8   :  { %v103_v24 = vpop.f32.mrf.mxu0 }
  0xd9   :  { %v142_v25 = vpack.c.bf16 %v1692_v23, %v1692_v23 }
  0xda   :  { %v1307_v26 = vpop.f32.mrf.mxu0 }
  0xdb   :  { %1325 = vmatmul.mubr.bf16.vlgmr.msra.gmra.mxu1 %v142_v25 }
  0xdc   :  { %1364 = vmatprep.mubr.msk.bf16.mxu1 %vm1615_vm0, %v1614_v0  ;;  %1349 = vmatpush3.bf16.msra.mxu1 %v1511_v29 }
  0xdd   :  { %1350 = vmatprep.subr.bf16.mxu1 %v1614_v0 }
  0xe0   :  { %1351 = vmatpush3.bf16.msra.mxu1 %v1512_v30  ;;  %v1541_v30 = vld [vmem:[#allocation2 + $0x148] sm:$0xff]  }
  0xe1   :  { %1352 = vmatprep.subr.bf16.mxu1 %v1614_v0 }
  0xe4   :  { %1353 = vmatpush3.bf16.msra.mxu1 %v1513_v31  ;;  %v1542_v31 = vld [vmem:[#allocation2 + $0x140] sm:$0xff]  }
  0xe5   :  { %1354 = vmatprep.subr.bf16.mxu1 %v1614_v0 }
  0xe8   :  { %1355 = vmatpush3.bf16.msra.mxu1 %v1514_v32  ;;  %v1543_v32 = vld [vmem:[#allocation2 + $0x1b8] sm:$0xff]  }
  0xe9   :  { %1356 = vmatprep.subr.bf16.mxu1 %v1614_v0 }
  0xec   :  { %1357 = vmatpush3.bf16.msra.mxu1 %v1515_v33  ;;  %v1544_v33 = vld [vmem:[#allocation2 + $0x1b0] sm:$0xff]  }
  0xed   :  { %1358 = vmatprep.subr.bf16.mxu1 %v1614_v0 }
  0xf0   :  { %1359 = vmatpush3.bf16.msra.mxu1 %v1516_v34  ;;  %v1545_v34 = vld [vmem:[#allocation2 + $0x1a8] sm:$0xff]  }
  0xf1   :  { %1360 = vmatprep.subr.bf16.mxu1 %v1614_v0 }
  0xf4   :  { %1361 = vmatpush3.bf16.msra.mxu1 %v1517_v43 }
  0xf5   :  { %1362 = vmatprep.subr.bf16.mxu1 %v1614_v0 }
  0xf8   :  { %1363 = vmatpush3.bf16.msra.mxu1 %v1518_v44 }
  0xf9   :  { %1388 = vmatprep.subr.bf16.mxu1 %v1614_v0 }
 0x19b   :  { %v229_v36 = vpop.f32.mrf.mxu1 }
 0x19c   :  { %v230_v37 = vadd.f32 %v1138_v35, %v229_v36  ;;  %v1546_v35 = vld [vmem:[#allocation2 + $0x1a0] sm:$0xff]   ;;  %v1547_v36 = vld [vmem:[#allocation2 + $0x198] sm:$0xff]  }
 0x19d   :  { %v1326_v38 = vpop.f32.mrf.mxu1 }
 0x19e   :  { %v235_v39 = vmax.f32 %v230_v37, 0.0  ;;  %v1548_v37 = vld [vmem:[#allocation2 + $0x190] sm:$0xff]   ;;  %v1174_v38 = vld [vmem:[%s1835_s4 + $0x4] ss:$0 sm:$0xff] }
 0x19f   :  { %v232_v40 = vpop.f32.mrf.mxu1 }
 0x1a0   :  { %v236_v41 = vpack.c.bf16 %v235_v39, %v235_v39 }
 0x1a1   :  { %v1327_v42 = vpop.f32.mrf.mxu1 }
 0x1a2   :  { %1345 = vmatmul.mubr.bf16.vlgmr.msra.gmra.mxu0 %v236_v41 }
 0x1a3   :  { %1384 = vmatprep.mubr.msk.bf16.mxu0 %vm1615_vm0, %v1614_v0  ;;  %1369 = vmatpush3.bf16.msra.mxu0 %v1519_v45 }
 0x1a4   :  { %1370 = vmatprep.subr.bf16.mxu0 %v1614_v0 }
 0x1a7   :  { %1371 = vmatpush3.bf16.msra.mxu0 %v1520_v46  ;;  %v1549_v46 = vld [vmem:[#allocation2 + $0x188] sm:$0xff]  }
 0x1a8   :  { %1372 = vmatprep.subr.bf16.mxu0 %v1614_v0 }
 0x1ab   :  { %1373 = vmatpush3.bf16.msra.mxu0 %v1521_v47  ;;  %v1550_v47 = vld [vmem:[#allocation2 + $0x180] sm:$0xff]  }
 0x1ac   :  { %1374 = vmatprep.subr.bf16.mxu0 %v1614_v0 }
 0x1af   :  { %1375 = vmatpush3.bf16.msra.mxu0 %v1522_v48  ;;  %v1551_v48 = vld [vmem:[#allocation2 + $0x1f8] sm:$0xff]  }
 0x1b0   :  { %1376 = vmatprep.subr.bf16.mxu0 %v1614_v0 }
 0x1b3   :  { %1377 = vmatpush3.bf16.msra.mxu0 %v1523_v49  ;;  %v1552_v49 = vld [vmem:[#allocation2 + $0x1f0] sm:$0xff]  }
 0x1b4   :  { %1378 = vmatprep.subr.bf16.mxu0 %v1614_v0 }
 0x1b7   :  { %1379 = vmatpush3.bf16.msra.mxu0 %v1524_v50  ;;  %v1553_v50 = vld [vmem:[#allocation2 + $0x1e8] sm:$0xff]  }
 0x1b8   :  { %1380 = vmatprep.subr.bf16.mxu0 %v1614_v0 }
 0x1bb   :  { %1381 = vmatpush3.bf16.msra.mxu0 %v1525_v60 }
 0x1bc   :  { %1382 = vmatprep.subr.bf16.mxu0 %v1614_v0 }
 0x1bf   :  { %1383 = vmatpush3.bf16.msra.mxu0 %v1526_v61 }
 0x1c0   :  { %1408 = vmatprep.subr.bf16.mxu0 %v1614_v0 }
 0x262   :  { %v323_v52 = vpop.f32.mrf.mxu0 }
 0x263   :  { %v324_v53 = vadd.f32 %v1147_v51, %v323_v52  ;;  %v1554_v51 = vld [vmem:[#allocation2 + $0x1e0] sm:$0xff]   ;;  %v1555_v52 = vld [vmem:[#allocation2 + $0x1d8] sm:$0xff]  }
 0x264   :  { %v1346_v54 = vpop.f32.mrf.mxu0 }
 0x265   :  { %v329_v55 = vadd.f32 %v324_v53, %v1692_v23  ;;  %v1556_v53 = vld [vmem:[#allocation2 + $0x1d0] sm:$0xff]   ;;  %v1183_v54 = vld [vmem:[%s1835_s4 + $0x5] ss:$0 sm:$0xff] }
 0x266   :  { %v326_v56 = vpop.f32.mrf.mxu0 }
 0x267   :  { %v1723_v57 = vmax.f32 %v329_v55, 0.0 }
 0x268   :  { %v1347_v58 = vpop.f32.mrf.mxu0 }
 0x269   :  { %v367_v59 = vpack.c.bf16 %v1723_v57, %v1723_v57 }
 0x26b   :  { %1365 = vmatmul.mubr.bf16.vlgmr.msra.gmra.mxu1 %v367_v59 }
 0x26c   :  { %1404 = vmatprep.mubr.msk.bf16.mxu1 %vm1615_vm0, %v1614_v0  ;;  %1389 = vmatpush3.bf16.msra.mxu1 %v1527_v62 }
 0x26d   :  { %1390 = vmatprep.subr.bf16.mxu1 %v1614_v0 }
 0x270   :  { %1391 = vmatpush3.bf16.msra.mxu1 %v1528_v63  ;;  %v1557_v63 = vld [vmem:[#allocation2 + $0x1c8] sm:$0xff]  }
 0x271   :  { %1392 = vmatprep.subr.bf16.mxu1 %v1614_v0 }
 0x274   :  { %1393 = vmatpush3.bf16.msra.mxu1 %v1529_v1  ;;  %v1558_v1 = vld [vmem:[#allocation2 + $0x1c0] sm:$0xff]  }
 0x275   :  { %1394 = vmatprep.subr.bf16.mxu1 %v1614_v0 }
 0x278   :  { %1395 = vmatpush3.bf16.msra.mxu1 %v1530_v2  ;;  %v1559_v2 = vld [vmem:[%s1836_s5 + $0x38] sm:$0xff]  }
 0x279   :  { %1396 = vmatprep.subr.bf16.mxu1 %v1614_v0 }
 0x27c   :  { %1397 = vmatpush3.bf16.msra.mxu1 %v1531_v3  ;;  %v1560_v3 = vld [vmem:[%s1836_s5 + $0x30] sm:$0xff]  }
 0x27d   :  { %1398 = vmatprep.subr.bf16.mxu1 %v1614_v0 }
 0x280   :  { %1399 = vmatpush3.bf16.msra.mxu1 %v1532_v4  ;;  %v1561_v4 = vld [vmem:[%s1836_s5 + $0x28] sm:$0xff]  }
 0x281   :  { %1400 = vmatprep.subr.bf16.mxu1 %v1614_v0 }
 0x284   :  { %1401 = vmatpush3.bf16.msra.mxu1 %v1533_v13 }
 0x285   :  { %1402 = vmatprep.subr.bf16.mxu1 %v1614_v0 }
 0x288   :  { %1403 = vmatpush3.bf16.msra.mxu1 %v1534_v14 }
 0x289   :  { %1428 = vmatprep.subr.bf16.mxu1 %v1614_v0 }
 0x32b   :  { %v454_v6 = vpop.f32.mrf.mxu1 }
 0x32c   :  { %v455_v7 = vadd.f32 %v1156_v5, %v454_v6  ;;  %v1562_v5 = vld [vmem:[%s1836_s5 + $0x20] sm:$0xff]   ;;  %v1563_v6 = vld [vmem:[%s1836_s5 + $0x18] sm:$0xff]  }
 0x32d   :  { %v1366_v8 = vpop.f32.mrf.mxu1 }
 0x32e   :  { %v460_v9 = vmax.f32 %v455_v7, 0.0  ;;  %v1564_v7 = vld [vmem:[%s1836_s5 + $0x10] sm:$0xff]   ;;  %v1192_v8 = vld [vmem:[%s1835_s4 + $0x6] ss:$0 sm:$0xff] }
 0x32f   :  { %v457_v10 = vpop.f32.mrf.mxu1 }
 0x330   :  { %v461_v11 = vpack.c.bf16 %v460_v9, %v460_v9 }
 0x331   :  { %v1367_v12 = vpop.f32.mrf.mxu1 }
 0x332   :  { %1385 = vmatmul.mubr.bf16.vlgmr.msra.gmra.mxu0 %v461_v11 }
 0x333   :  { %1424 = vmatprep.mubr.msk.bf16.mxu0 %vm1615_vm0, %v1614_v0  ;;  %1409 = vmatpush3.bf16.msra.mxu0 %v1535_v15 }
 0x334   :  { %1410 = vmatprep.subr.bf16.mxu0 %v1614_v0 }
 0x337   :  { %1411 = vmatpush3.bf16.msra.mxu0 %v1536_v16  ;;  %v1565_v16 = vld [vmem:[%s1836_s5 + $0x8] sm:$0xff]  }
 0x338   :  { %1412 = vmatprep.subr.bf16.mxu0 %v1614_v0 }
 0x33b   :  { %1413 = vmatpush3.bf16.msra.mxu0 %v1537_v17  ;;  %v1566_v17 = vld [vmem:[%s1836_s5] sm:$0xff]   ;;  %s1126_s5 = sshll.u32 %s1616_s17, 4  ;;  %s1127_s5 = int_to_ptr.vmem [resolvable:$true] %s1126_s5 }
 0x33c   :  { %1414 = vmatprep.subr.bf16.mxu0 %v1614_v0  ;;  %p1592_p6 = scmp.lt.s32.totalorder %s1127_s5, %s1127_s5 }
 0x33f   :  { %1415 = vmatpush3.bf16.msra.mxu0 %v1538_v18  ;;  %v1201_v18 = vld [vmem:[%s1835_s4 + $0x7] ss:$0 sm:$0xff]  ;;  %s1587_s4 = scalar_lea.vmem %s1127_s5, 128 }
 0x340   :  { %1416 = vmatprep.subr.bf16.mxu0 %v1614_v0  ;;  %p1588_p5 = scmp.ne.s32.totalorder %s1127_s5, %s1587_s4  ;;  %p1593_p7 = scmp.lt.s32.totalorder %s1587_s4, %s1587_s4 }
 0x342   :  { %p1594_p8 = por %p1593_p7, %p1592_p6 }
 0x343   :  { %1417 = vmatpush3.bf16.msra.mxu0 %v1539_v19 }
 0x344   :  { %1418 = vmatprep.subr.bf16.mxu0 %v1614_v0  ;;  %p1595_p9 = pnand %p1594_p8, %p1588_p5 }
 0x347   :  { %1419 = vmatpush3.bf16.msra.mxu0 %v1540_v20 }
 0x348   :  { %1420 = vmatprep.subr.bf16.mxu0 %v1614_v0 }
 0x34b   :  { %1421 = vmatpush3.bf16.msra.mxu0 %v1541_v30 }
 0x34c   :  { %1422 = vmatprep.subr.bf16.mxu0 %v1614_v0 }
 0x34f   :  { %1423 = vmatpush3.bf16.msra.mxu0 %v1542_v31 }
 0x350   :  { %1448 = vmatprep.subr.bf16.mxu0 %v1614_v0 }
 0x3f2   :  { %v548_v22 = vpop.f32.mrf.mxu0 }
 0x3f3   :  { %v549_v23 = vadd.f32 %v1165_v21, %v548_v22 }
 0x3f4   :  { %v1386_v24 = vpop.f32.mrf.mxu0 }
 0x3f5   :  { %v554_v25 = vadd.f32 %v549_v23, %v1723_v57 }
 0x3f6   :  { %v551_v26 = vpop.f32.mrf.mxu0 }
 0x3f7   :  { %v1754_v27 = vmax.f32 %v554_v25, 0.0 }
 0x3f8   :  { %v1387_v28 = vpop.f32.mrf.mxu0 }
 0x3f9   :  { %v592_v29 = vpack.c.bf16 %v1754_v27, %v1754_v27 }
 0x3fb   :  { %1405 = vmatmul.mubr.bf16.vlgmr.msra.gmra.mxu1 %v592_v29 }
 0x3fc   :  { %1444 = vmatprep.mubr.msk.bf16.mxu1 %vm1615_vm0, %v1614_v0  ;;  %1429 = vmatpush3.bf16.msra.mxu1 %v1543_v32 }
 0x3fd   :  { %1430 = vmatprep.subr.bf16.mxu1 %v1614_v0 }
 0x400   :  { %1431 = vmatpush3.bf16.msra.mxu1 %v1544_v33 }
 0x401   :  { %1432 = vmatprep.subr.bf16.mxu1 %v1614_v0 }
 0x404   :  { %1433 = vmatpush3.bf16.msra.mxu1 %v1545_v34 }
 0x405   :  { %1434 = vmatprep.subr.bf16.mxu1 %v1614_v0 }
 0x408   :  { %1435 = vmatpush3.bf16.msra.mxu1 %v1546_v35 }
 0x409   :  { %1436 = vmatprep.subr.bf16.mxu1 %v1614_v0 }
 0x40c   :  { %1437 = vmatpush3.bf16.msra.mxu1 %v1547_v36 }
 0x40d   :  { %1438 = vmatprep.subr.bf16.mxu1 %v1614_v0 }
 0x410   :  { %1439 = vmatpush3.bf16.msra.mxu1 %v1548_v37 }
 0x411   :  { %1440 = vmatprep.subr.bf16.mxu1 %v1614_v0 }
 0x414   :  { %1441 = vmatpush3.bf16.msra.mxu1 %v1549_v46 }
 0x415   :  { %1442 = vmatprep.subr.bf16.mxu1 %v1614_v0 }
 0x418   :  { %1443 = vmatpush3.bf16.msra.mxu1 %v1550_v47 }
 0x419   :  { %1468 = vmatprep.subr.bf16.mxu1 %v1614_v0 }
 0x4bb   :  { %v679_v39 = vpop.f32.mrf.mxu1 }
 0x4bc   :  { %v680_v40 = vadd.f32 %v1174_v38, %v679_v39 }
 0x4bd   :  { %v1406_v41 = vpop.f32.mrf.mxu1 }
 0x4be   :  { %v685_v42 = vmax.f32 %v680_v40, 0.0 }
 0x4bf   :  { %v682_v43 = vpop.f32.mrf.mxu1 }
 0x4c0   :  { %v686_v44 = vpack.c.bf16 %v685_v42, %v685_v42 }
 0x4c1   :  { %v1407_v45 = vpop.f32.mrf.mxu1 }
 0x4c2   :  { %1425 = vmatmul.mubr.bf16.vlgmr.msra.gmra.mxu0 %v686_v44 }
 0x4c3   :  { %1464 = vmatprep.mubr.msk.bf16.mxu0 %vm1615_vm0, %v1614_v0  ;;  %1449 = vmatpush3.bf16.msra.mxu0 %v1551_v48 }
 0x4c4   :  { %1450 = vmatprep.subr.bf16.mxu0 %v1614_v0 }
 0x4c7   :  { %1451 = vmatpush3.bf16.msra.mxu0 %v1552_v49 }
 0x4c8   :  { %1452 = vmatprep.subr.bf16.mxu0 %v1614_v0 }
 0x4cb   :  { %1453 = vmatpush3.bf16.msra.mxu0 %v1553_v50 }
 0x4cc   :  { %1454 = vmatprep.subr.bf16.mxu0 %v1614_v0 }
 0x4cf   :  { %1455 = vmatpush3.bf16.msra.mxu0 %v1554_v51 }
 0x4d0   :  { %1456 = vmatprep.subr.bf16.mxu0 %v1614_v0 }
 0x4d3   :  { %1457 = vmatpush3.bf16.msra.mxu0 %v1555_v52 }
 0x4d4   :  { %1458 = vmatprep.subr.bf16.mxu0 %v1614_v0 }
 0x4d7   :  { %1459 = vmatpush3.bf16.msra.mxu0 %v1556_v53 }
 0x4d8   :  { %1460 = vmatprep.subr.bf16.mxu0 %v1614_v0 }
 0x4db   :  { %1461 = vmatpush3.bf16.msra.mxu0 %v1557_v63 }
 0x4dc   :  { %1462 = vmatprep.subr.bf16.mxu0 %v1614_v0 }
 0x4df   :  { %1463 = vmatpush3.bf16.msra.mxu0 %v1558_v1 }
 0x582   :  { %v773_v55 = vpop.f32.mrf.mxu0 }
 0x583   :  { %v774_v56 = vadd.f32 %v1183_v54, %v773_v55 }
 0x584   :  { %v1426_v57 = vpop.f32.mrf.mxu0 }
 0x585   :  { %v779_v58 = vadd.f32 %v774_v56, %v1754_v27 }
 0x586   :  { %v776_v59 = vpop.f32.mrf.mxu0 }
 0x587   :  { %v780_v60 = vmax.f32 %v779_v58, 0.0 }
 0x588   :  { %v1427_v61 = vpop.f32.mrf.mxu0 }
 0x589   :  { %v817_v62 = vpack.c.bf16 %v780_v60, %v780_v60 }
 0x58b   :  { %1445 = vmatmul.mubr.bf16.vlgmr.msra.gmra.mxu1 %v817_v62 }
 0x58c   :  { %1484 = vmatprep.mubr.msk.bf16.mxu1 %vm1615_vm0, %v1614_v0  ;;  %1469 = vmatpush3.bf16.msra.mxu1 %v1559_v2 }
 0x58d   :  { %1470 = vmatprep.subr.bf16.mxu1 %v1614_v0 }
 0x590   :  { %1471 = vmatpush3.bf16.msra.mxu1 %v1560_v3 }
 0x591   :  { %1472 = vmatprep.subr.bf16.mxu1 %v1614_v0 }
 0x594   :  { %1473 = vmatpush3.bf16.msra.mxu1 %v1561_v4 }
 0x595   :  { %1474 = vmatprep.subr.bf16.mxu1 %v1614_v0 }
 0x598   :  { %1475 = vmatpush3.bf16.msra.mxu1 %v1562_v5 }
 0x599   :  { %1476 = vmatprep.subr.bf16.mxu1 %v1614_v0 }
 0x59c   :  { %1477 = vmatpush3.bf16.msra.mxu1 %v1563_v6 }
 0x59d   :  { %1478 = vmatprep.subr.bf16.mxu1 %v1614_v0 }
 0x5a0   :  { %1479 = vmatpush3.bf16.msra.mxu1 %v1564_v7 }
 0x5a1   :  { %1480 = vmatprep.subr.bf16.mxu1 %v1614_v0 }
 0x5a4   :  { %1481 = vmatpush3.bf16.msra.mxu1 %v1565_v16 }
 0x5a5   :  { %1482 = vmatprep.subr.bf16.mxu1 %v1614_v0  ;;  %v1210_v0 = vld [vmem:[%s1837_s6] ss:$0 sm:$0xff] }
 0x5a8   :  { %1483 = vmatpush3.bf16.msra.mxu1 %v1566_v17 }
 0x64b   :  { %v904_v9 = vpop.f32.mrf.mxu1 }
 0x64c   :  { %v905_v10 = vadd.f32 %v1192_v8, %v904_v9 }
 0x64d   :  { %v1446_v11 = vpop.f32.mrf.mxu1 }
 0x64e   :  { %v910_v12 = vmax.f32 %v905_v10, 0.0 }
 0x64f   :  { %v907_v13 = vpop.f32.mrf.mxu1 }
 0x650   :  { %v911_v14 = vpack.c.bf16 %v910_v12, %v910_v12 }
 0x651   :  { %v1447_v15 = vpop.f32.mrf.mxu1 }
 0x652   :  { %1465 = vmatmul.mubr.bf16.vlgmr.msra.gmra.mxu0 %v911_v14 }
 0x712   :  { %v998_v19 = vpop.f32.mrf.mxu0 }
 0x713   :  { %v999_v20 = vadd.f32 %v1201_v18, %v998_v19 }
 0x714   :  { %v1466_v21 = vpop.f32.mrf.mxu0 }
 0x715   :  { %v1004_v22 = vadd.f32 %v999_v20, %v780_v60 }
 0x716   :  { %v1001_v23 = vpop.f32.mrf.mxu0 }
 0x717   :  { %v1005_v24 = vmax.f32 %v1004_v22, 0.0 }
 0x718   :  { %v1467_v25 = vpop.f32.mrf.mxu0 }
 0x719   :  { %v1022_v26 = vpack.c.bf16 %v1005_v24, %v1005_v24 }
 0x71b   :  { %1485 = vmatmul.mubr.bf16.vlgmr.msra.gmra.mxu1 %v1022_v26 }
 0x7db   :  { %v1112_v27 = vpop.f32.mrf.mxu1 }
 0x7dc   :  { %v1113_v28 = vadd.f32 %v1210_v0, %v1112_v27 }
 0x7dd   :  { %v1486_v29 = vpop.f32.mrf.mxu1 }
 0x7de   :  { %1119 = vst.msk [vmem:[#allocation5] sm:$0xff] %vm1118_vm3, %v1113_v28 }
 0x7df   :  { %v1115_v30 = vpop.f32.mrf.mxu1 }
 0x7e0   :  { %1598 = shalt.err (!%p1595_p9)
}
 0x7e1   :  { %1129 = dma.vmem_to_hbm [thread:$0]  %s1127_s5, 128, %s1838_s7, [#allocation4]   ;;  %v1487_v31 = vpop.f32.mrf.mxu1 }
 0x7e2   :  { %1609 = dma.done.wait [#allocation4], 128  }
 0x7e3   :  { %1610 = vsyncadd [#allocation4], 4294967168 }
 0x7e4   :  { %1133 = vsyncpa [#allocation3], 1 }
 0x7e5   :  { %1134 = vsyncpa [#allocation4], 1 }

</bundles_post_ra>
